<compile_context>
chip_gen: v5e
topology: v5e:2x2
jax: 0.10.0
libtpu: 0.0.40
codegen_flags: <defaults>
</compile_context>

<pallas_src>
from typing import Optional, Tuple

import jax
import jax.numpy as jnp
from jax.experimental import pallas as pl
from jax.experimental.pallas import tpu as pltpu


N_PAD = 128             # lane-native width of the hidden trunk / each head block
BIAS_ROWS = 8           # bias rows appended to the weight slab (3 used, sublane-padded)
SMALL_BATCH_MAX = 512   # at/below this everything stays VMEM resident (gridless path)
MAX_BATCH_BLOCK = 512   # grid-path row tile (review: 512-1024; tiles stay a few 100 KB)


def _round_up(x: int, m: int) -> int:
    return (x + m - 1) // m * m


# -----------------------------------------------------------------------------
# Fused policy kernel.
#
# Weight+bias slab  wb_ref : bf16 [S_pad + 2*N_PAD + BIAS_ROWS, 2*N_PAD]
#   rows [0 : S_pad)                cols [0:N)    -> W1   (trunk)
#   rows [S_pad : S_pad+N)          cols [0:N)    -> Wc   (continuous trunk)
#                                   cols [N:2N)   -> Wd   (discrete logits)
#   rows [S_pad+N : S_pad+2N)       cols [0:N)    -> Wm   (mean)
#                                   cols [N:2N)   -> Ws   (logstd)
#   row  S_pad+2N                   cols [0:N)    -> b1
#   row  S_pad+2N+1                 [bc | bd]
#   row  S_pad+2N+2                 [bm | bs]
# Output slab  out_ref : f32 [B, out_w]  with packed layout
#   lanes [off_d : off_d+d) = logits, [off_m : off_m+c) = mean,
#   lanes [off_s : off_s+c) = std, remaining lanes zero.
# All padding entries are zero, so the math is identical to the unpadded MLP.
# -----------------------------------------------------------------------------
def _make_policy_kernel(s_pad: int, d: int, c: int,
                        off_d: int, off_m: int, off_s: int, out_w: int):
    N = N_PAD
    BR = s_pad + 2 * N          # first bias row

    def kernel(state_ref, wb_ref, out_ref):
        x = state_ref[...].astype(jnp.bfloat16)          # bf16 MXU operands

        # Biases (stored as slab rows; converted to f32 for VPU epilogues).
        b1 = wb_ref[BR:BR + 1, 0:N].astype(jnp.float32)
        b2 = wb_ref[BR + 1:BR + 2, :].astype(jnp.float32)
        b3 = wb_ref[BR + 2:BR + 3, :].astype(jnp.float32)

        # Shared trunk: h = relu(x @ W1 + b1)   (pad lanes stay exactly 0)
        h = jnp.dot(x, wb_ref[0:s_pad, 0:N],
                    preferred_element_type=jnp.float32) + b1
        h = jnp.maximum(h, 0.0)

        # Fused head #1: one matmul -> [ch_pre | d_logits]
        t1 = jnp.dot(h.astype(jnp.bfloat16), wb_ref[s_pad:s_pad + N, :],
                     preferred_element_type=jnp.float32) + b2
        ch = jnp.maximum(t1[:, 0:N], 0.0)                 # continuous trunk (relu)

        # Fused head #2: one matmul -> [mean | logstd]
        t2 = jnp.dot(ch.astype(jnp.bfloat16), wb_ref[s_pad + N:s_pad + 2 * N, :],
                     preferred_element_type=jnp.float32) + b3
        std = jnp.exp(t2[:, N:N + c])                     # EUP, only the useful lanes

        # Packed lane-dense output block: zero-init, then three tiny masked
        # stores into VMEM; the HBM writeback is one full unmasked [B, out_w]
        # DMA (3x fewer bytes than the previous 3x128 slab).
        out_ref[...] = jnp.zeros_like(out_ref)
        out_ref[:, off_d:off_d + d] = t1[:, N:N + d]      # OneHotCategorical logits
        out_ref[:, off_m:off_m + c] = t2[:, 0:c]          # Normal loc
        out_ref[:, off_s:off_s + c] = std                 # Normal scale

    return kernel


def policy_forward(state, wb_slab, *, s_pad: int, d: int, c: int,
                   layout: Tuple[int, int, int, int]):
    """Run the fused policy kernel; returns the packed output slab [B, out_w]."""
    off_d, off_m, off_s, out_w = layout
    B, S = state.shape
    kernel = _make_policy_kernel(s_pad, d, c, off_d, off_m, off_s, out_w)

    def cost(rows: int) -> pl.CostEstimate:
        return pl.CostEstimate(
            flops=2 * rows * (s_pad * N_PAD + 2 * (N_PAD * 2 * N_PAD)),
            transcendentals=rows * c,
            bytes_accessed=4 * rows * (s_pad + out_w) + 2 * int(wb_slab.size))

    if B <= SMALL_BATCH_MAX:
        # Small-batch path: everything resident in VMEM (well under even the
        # 32 MiB default scoped limit), single invocation, minimal DMA count.
        if S != s_pad:
            state = jnp.pad(state, ((0, 0), (0, s_pad - S)))
        vmem = pl.BlockSpec(memory_space=pltpu.MemorySpace.VMEM)
        return pl.pallas_call(
            kernel,
            out_shape=jax.ShapeDtypeStruct((B, out_w), jnp.float32),
            in_specs=[vmem, vmem],
            out_specs=vmem,
            cost_estimate=cost(B),
        )(state, wb_slab)

    # Large-batch path: batch-tiled grid, rows padded up to a multiple of the
    # block (no fully-resident fallback), >= 2 steps so both v7x TCs get work.
    bb = min(MAX_BATCH_BLOCK, _round_up((B + 1) // 2, 8))
    b_pad = _round_up(B, bb)
    if (b_pad, s_pad) != (B, S):
        state = jnp.pad(state, ((0, b_pad - B), (0, s_pad - S)))

    out = pl.pallas_call(
        kernel,
        out_shape=jax.ShapeDtypeStruct((b_pad, out_w), jnp.float32),
        grid=(b_pad // bb,),
        in_specs=[
            pl.BlockSpec((bb, s_pad), lambda i: (i, 0)),
            # Constant block index: the ~150 KB bf16 weight slab is fetched once.
            pl.BlockSpec(wb_slab.shape, lambda i: (0, 0)),
        ],
        out_specs=pl.BlockSpec((bb, out_w), lambda i: (i, 0)),
        compiler_params=pltpu.CompilerParams(
            dimension_semantics=("parallel",)),
        cost_estimate=cost(b_pad),
    )(state, wb_slab)
    return out[:B] if b_pad != B else out


class ModelPolicyPallas:
    """JAX/Pallas analogue of ModelBasePolicy with a standard MLP policy head."""

    def __init__(self, state_size: int, d_action_size: int, c_action_size: int,
                 train_mode: bool, model_abs_dir: Optional[str] = None,
                 dense_n: int = 32, seed: int = 0):
        assert dense_n <= N_PAD and d_action_size <= N_PAD and c_action_size <= N_PAD
        self.state_size = state_size
        self.d_action_size = d_action_size
        self.c_action_size = c_action_size
        self.train_mode = train_mode
        self.model_abs_dir = model_abs_dir
        self.dense_n = dense_n
        # S padded to 16 so every bf16 slab slice sits on a (16,128) tile boundary.
        self.s_pad = _round_up(max(state_size, 16), 16)
        # Packed output layout: [logits | mean | std] in one 128-lane block when
        # they fit, else one 128-lane block per quantity.
        d, c = d_action_size, c_action_size
        if d + 2 * c <= N_PAD:
            self.out_layout = (0, d, d + c, N_PAD)
        else:
            self.out_layout = (0, N_PAD, 2 * N_PAD, 3 * N_PAD)
        self.params = self._build_model(seed)
        self.wb_slab = self._pack_params(self.params)

    # ---- logical (unpadded) parameters, deterministic synthetic init ---------
    def _build_model(self, seed: int):
        keys = jax.random.split(jax.random.PRNGKey(seed), 5)

        def init(key, fan_in, fan_out):
            scale = 1.0 / jnp.sqrt(jnp.float32(fan_in))
            return (jax.random.uniform(key, (fan_in, fan_out), jnp.float32,
                                       minval=-1.0, maxval=1.0) * scale)

        n = self.dense_n
        return {
            "w1": init(keys[0], self.state_size, n),
            "b1": jnp.zeros((1, n), jnp.float32),
            "wd": init(keys[1], n, self.d_action_size),
            "bd": jnp.zeros((1, self.d_action_size), jnp.float32),
            "wc": init(keys[2], n, n),
            "bc": jnp.zeros((1, n), jnp.float32),
            "wm": init(keys[3], n, self.c_action_size),
            "bm": jnp.zeros((1, self.c_action_size), jnp.float32),
            "ws": init(keys[4], n, self.c_action_size),
            "bs": jnp.zeros((1, self.c_action_size), jnp.float32),
        }

    # ---- pack weights AND biases into one lane-padded bf16 slab (one DMA) ----
    def _pack_params(self, p):
        S_pad = self.s_pad
        n, d, c = self.dense_n, self.d_action_size, self.c_action_size
        N = N_PAD
        R = S_pad + 2 * N + BIAS_ROWS

        W = jnp.zeros((R, 2 * N), jnp.float32)
        W = W.at[0:self.state_size, 0:n].set(p["w1"])
        W = W.at[S_pad:S_pad + n, 0:n].set(p["wc"])
        W = W.at[S_pad:S_pad + n, N:N + d].set(p["wd"])
        W = W.at[S_pad + N:S_pad + N + n, 0:c].set(p["wm"])
        W = W.at[S_pad + N:S_pad + N + n, N:N + c].set(p["ws"])
        BR = S_pad + 2 * N
        W = W.at[BR, 0:n].set(p["b1"][0])
        W = W.at[BR + 1, 0:n].set(p["bc"][0])
        W = W.at[BR + 1, N:N + d].set(p["bd"][0])
        W = W.at[BR + 2, 0:c].set(p["bm"][0])
        W = W.at[BR + 2, N:N + c].set(p["bs"][0])
        return W.astype(jnp.bfloat16)

    def forward(self, state, obs_list=None
                ) -> Tuple[jnp.ndarray, Tuple[jnp.ndarray, jnp.ndarray]]:
        # obs_list accepted for signature parity but unused (see TODO above).
        out = policy_forward(state, self.wb_slab, s_pad=self.s_pad,
                             d=self.d_action_size, c=self.c_action_size,
                             layout=self.out_layout)
        off_d, off_m, off_s, _ = self.out_layout
        d, c = self.d_action_size, self.c_action_size
        d_logits = out[:, off_d:off_d + d]          # ~ OneHotCategorical(logits=...)
        mean = out[:, off_m:off_m + c]              # ~ Normal loc
        std = out[:, off_s:off_s + c]               # ~ Normal scale
        return d_logits, (mean, std)


def _reference(state, p):
    # Pure-JAX reference that mirrors the kernel's numerics: MXU operands are
    # bf16-rounded, accumulation and all elementwise math in f32.
    bf = lambda a: a.astype(jnp.bfloat16).astype(jnp.float32)
    h = jnp.maximum(bf(state) @ bf(p["w1"]) + p["b1"], 0.0)
    logits = bf(h) @ bf(p["wd"]) + p["bd"]
    ch = jnp.maximum(bf(h) @ bf(p["wc"]) + p["bc"], 0.0)
    mean = bf(ch) @ bf(p["wm"]) + p["bm"]
    std = jnp.exp(bf(ch) @ bf(p["ws"]) + p["bs"])
    return logits, mean, std


if __name__ == "__main__":
    # Small shapes consistent with the module: batch=8, state_size=32,
    # d_action_size=8, c_action_size=4, dense_n=32.
    B, STATE, D_ACT, C_ACT = 8, 32, 8, 4

    model = ModelPolicyPallas(STATE, D_ACT, C_ACT, train_mode=True, seed=0)

    # --- small-batch (gridless, fully VMEM-resident) path ---------------------
    state = jax.random.normal(jax.random.PRNGKey(0), (B, STATE), jnp.float32)
    d_logits, (mean, std) = model.forward(state, obs_list=[])
    jax.block_until_ready((d_logits, mean, std))

    ref_logits, ref_mean, ref_std = _reference(state, model.params)
    assert d_logits.shape == (B, D_ACT) and mean.shape == (B, C_ACT) and std.shape == (B, C_ACT)
    assert jnp.allclose(d_logits, ref_logits, atol=5e-3, rtol=5e-3)
    assert jnp.allclose(mean, ref_mean, atol=5e-3, rtol=5e-3)
    assert jnp.allclose(std, ref_std, atol=5e-3, rtol=5e-3)

    # --- large-batch (batch-tiled grid, padded B, "parallel" semantics) -------
    B2 = 1200   # not a multiple of the block: exercises pad-up + tail slicing
    state2 = jax.random.normal(jax.random.PRNGKey(1), (B2, STATE), jnp.float32)
    d2, (m2, s2) = model.forward(state2, obs_list=[])
    jax.block_until_ready((d2, m2, s2))

    r_logits2, r_mean2, r_std2 = _reference(state2, model.params)
    assert d2.shape == (B2, D_ACT) and m2.shape == (B2, C_ACT) and s2.shape == (B2, C_ACT)
    assert jnp.allclose(d2, r_logits2, atol=5e-3, rtol=5e-3)
    assert jnp.allclose(m2, r_mean2, atol=5e-3, rtol=5e-3)
    assert jnp.allclose(s2, r_std2, atol=5e-3, rtol=5e-3)

    print("KERNEL_OK")
</pallas_src>

<mosaic_0001>
module attributes {stable_mosaic.version = 11 : i64} {
  func.func @kernel(%arg0: memref<8x32xf32, #tpu.memory_space<vmem>>, %arg1: memref<296x256xbf16, #tpu.memory_space<vmem>>, %arg2: memref<8x128xf32, #tpu.memory_space<vmem>>) attributes {dimension_semantics = [], scalar_prefetch = 0 : i64, scratch_operands = 0 : i64, tpu.core_type = #tpu.core_type<tc>} {
    %c0 = arith.constant 0 : index
    %c0_0 = arith.constant 0 : index
    %0 = vector.load %arg0[%c0, %c0_0] : memref<8x32xf32, #tpu.memory_space<vmem>>, vector<8x32xf32>
    %1 = arith.truncf %0 : vector<8x32xf32> to vector<8x32xbf16>
    %c288 = arith.constant 288 : index
    %c0_1 = arith.constant 0 : index
    %2 = vector.load %arg1[%c288, %c0_1] : memref<296x256xbf16, #tpu.memory_space<vmem>>, vector<1x128xbf16>
    %3 = arith.extf %2 : vector<1x128xbf16> to vector<1x128xf32>
    %c289 = arith.constant 289 : index
    %c0_2 = arith.constant 0 : index
    %4 = vector.load %arg1[%c289, %c0_2] : memref<296x256xbf16, #tpu.memory_space<vmem>>, vector<1x256xbf16>
    %5 = arith.extf %4 : vector<1x256xbf16> to vector<1x256xf32>
    %c290 = arith.constant 290 : index
    %c0_3 = arith.constant 0 : index
    %6 = vector.load %arg1[%c290, %c0_3] : memref<296x256xbf16, #tpu.memory_space<vmem>>, vector<1x256xbf16>
    %7 = arith.extf %6 : vector<1x256xbf16> to vector<1x256xf32>
    %c0_4 = arith.constant 0 : index
    %c0_5 = arith.constant 0 : index
    %8 = vector.load %arg1[%c0_4, %c0_5] : memref<296x256xbf16, #tpu.memory_space<vmem>>, vector<32x128xbf16>
    %cst = arith.constant dense<0.000000e+00> : vector<8x128xf32>
    %9 = tpu.matmul %1, %8, %cst {dimension_numbers = #tpu.dot_dimension_numbers<[1], [0], [0], [1], [0, 0, 1, 1], [], []>} : vector<8x32xbf16>, vector<32x128xbf16>, vector<8x128xf32> -> vector<8x128xf32>
    %10 = vector.broadcast %3 : vector<1x128xf32> to vector<8x128xf32>
    %11 = arith.addf %9, %10 : vector<8x128xf32>
    %cst_6 = arith.constant 0.000000e+00 : f32
    %12 = vector.broadcast %cst_6 : f32 to vector<8x128xf32>
    %13 = arith.maximumf %11, %12 : vector<8x128xf32>
    %14 = arith.truncf %13 : vector<8x128xf32> to vector<8x128xbf16>
    %c32 = arith.constant 32 : index
    %c0_7 = arith.constant 0 : index
    %15 = vector.load %arg1[%c32, %c0_7] : memref<296x256xbf16, #tpu.memory_space<vmem>>, vector<128x256xbf16>
    %cst_8 = arith.constant dense<0.000000e+00> : vector<8x256xf32>
    %16 = tpu.matmul %14, %15, %cst_8 {dimension_numbers = #tpu.dot_dimension_numbers<[1], [0], [0], [1], [0, 0, 1, 1], [], []>} : vector<8x128xbf16>, vector<128x256xbf16>, vector<8x256xf32> -> vector<8x256xf32>
    %17 = vector.broadcast %5 : vector<1x256xf32> to vector<8x256xf32>
    %18 = arith.addf %16, %17 : vector<8x256xf32>
    %19 = vector.extract_strided_slice %18 {offsets = [0, 0], sizes = [8, 128], strides = [1, 1]} : vector<8x256xf32> to vector<8x128xf32>
    %cst_9 = arith.constant 0.000000e+00 : f32
    %20 = vector.broadcast %cst_9 : f32 to vector<8x128xf32>
    %21 = arith.maximumf %19, %20 : vector<8x128xf32>
    %22 = arith.truncf %21 : vector<8x128xf32> to vector<8x128xbf16>
    %c160 = arith.constant 160 : index
    %c0_10 = arith.constant 0 : index
    %23 = vector.load %arg1[%c160, %c0_10] : memref<296x256xbf16, #tpu.memory_space<vmem>>, vector<128x256xbf16>
    %cst_11 = arith.constant dense<0.000000e+00> : vector<8x256xf32>
    %24 = tpu.matmul %22, %23, %cst_11 {dimension_numbers = #tpu.dot_dimension_numbers<[1], [0], [0], [1], [0, 0, 1, 1], [], []>} : vector<8x128xbf16>, vector<128x256xbf16>, vector<8x256xf32> -> vector<8x256xf32>
    %25 = vector.broadcast %7 : vector<1x256xf32> to vector<8x256xf32>
    %26 = arith.addf %24, %25 : vector<8x256xf32>
    %27 = vector.extract_strided_slice %26 {offsets = [0, 128], sizes = [8, 4], strides = [1, 1]} : vector<8x256xf32> to vector<8x4xf32>
    %28 = math.exp %27 : vector<8x4xf32>
    %cst_12 = arith.constant 0.000000e+00 : f32
    %29 = vector.broadcast %cst_12 : f32 to vector<8x128xf32>
    %c0_13 = arith.constant 0 : index
    %c0_14 = arith.constant 0 : index
    %30 = vector.load %arg2[%c0_13, %c0_14] : memref<8x128xf32, #tpu.memory_space<vmem>>, vector<8x128xf32>
    tpu.vector_store %arg2[%c0_13, %c0_14], %29 {strides = array<i32>} : memref<8x128xf32, #tpu.memory_space<vmem>>, vector<8x128xf32>,
    %31 = vector.extract_strided_slice %18 {offsets = [0, 128], sizes = [8, 8], strides = [1, 1]} : vector<8x256xf32> to vector<8x8xf32>
    %c0_15 = arith.constant 0 : index
    %c0_16 = arith.constant 0 : index
    %32 = vector.load %arg2[%c0_15, %c0_16] : memref<8x128xf32, #tpu.memory_space<vmem>>, vector<8x8xf32>
    tpu.vector_store %arg2[%c0_15, %c0_16], %31 {strides = array<i32>} : memref<8x128xf32, #tpu.memory_space<vmem>>, vector<8x8xf32>,
    %33 = vector.extract_strided_slice %26 {offsets = [0, 0], sizes = [8, 4], strides = [1, 1]} : vector<8x256xf32> to vector<8x4xf32>
    %c0_17 = arith.constant 0 : index
    %c8 = arith.constant 8 : index
    %34 = vector.load %arg2[%c0_17, %c8] : memref<8x128xf32, #tpu.memory_space<vmem>>, vector<8x4xf32>
    tpu.vector_store %arg2[%c0_17, %c8], %33 {strides = array<i32>} : memref<8x128xf32, #tpu.memory_space<vmem>>, vector<8x4xf32>,
    %c0_18 = arith.constant 0 : index
    %c12 = arith.constant 12 : index
    %35 = vector.load %arg2[%c0_18, %c12] : memref<8x128xf32, #tpu.memory_space<vmem>>, vector<8x4xf32>
    tpu.vector_store %arg2[%c0_18, %c12], %28 {strides = array<i32>} : memref<8x128xf32, #tpu.memory_space<vmem>>, vector<8x4xf32>,
    return
  }
}

</mosaic_0001>

<bundles_post_ra>
// kernel: tpu_custom_call.1
= control target key start
LH: loop header
LB: loop body
LE: loop exit
PB: predicated region body
PF: predicated region fallthrough
CT: control target
= control target key end

     0   :  { %7 = vsyncpa [#allocation3], 0  ;;  %s665_s0 = inlined_call_operand.hbm [shape: f32[8,32], index: 0, kind: input, shape index: {}]   ;;  %s666_s1 = inlined_call_operand.hbm [shape: bf16[296,256], index: 1, kind: input, shape index: {}]   ;;  %s667_s2 = inlined_call_operand.hbm [shape: f32[8,128], index: 2, kind: output, shape index: {}]  }
   0x1   :  { %8 = vsyncpa [#allocation6], 0 }
   0x2   :  { %9 = vsyncpa [#allocation4], 0  ;;  %s15_s11 = sshll.u32 %s665_s0, 4  ;;  %s632_s12 = smov [#allocation2]   ;;  %s16_s11 = int_to_ptr.hbm [resolvable:$true] %s15_s11 }
   0x3   :  { %s17_s13 = sshll.u32 %s632_s12, 4  ;;  %s25_s16 = sshll.u32 %s666_s1, 4  ;;  %s18_s13 = int_to_ptr.vmem [resolvable:$true] %s17_s13  ;;  %s26_s16 = int_to_ptr.hbm [resolvable:$true] %s25_s16 }
   0x4   :  { %20 = dma.hbm_to_vmem [thread:$0]  %s16_s11, 128, %s18_s13, [#allocation3]  }
   0x5   :  { %s633_s17 = smov [#allocation5]   ;;  %s634_s19 = smov 128  }
   0x6   :  { %s27_s18 = sshll.u32 %s633_s17, 4  ;;  %s635_s20 = smov 8   ;;  %s28_s18 = int_to_ptr.vmem [resolvable:$true] %s27_s18 }
   0x7   :  { %33 = dma.hbm_to_vmem [thread:$0]  %s26_s16, 4736, %s28_s18, [#allocation6], %s634_s19, %s634_s19, %s635_s20  }
   0x8   :  { %626 = dma.done.wait [#allocation3], 128  }
   0x9   :  { %627 = vsyncadd [#allocation3], 4294967168 }
   0xa   :  { %628 = dma.done.wait [#allocation6], 4736  }
   0xb   :  { %629 = vsyncadd [#allocation6], 4294962560  ;;  %v380_v0 = vld [vmem:[#allocation5 + $0x10] sm:$0xf]  ;;  %v512_v1 = vld [vmem:[#allocation5 + $0x14] sm:$0xf0] }
   0xc   :  { %v376_v2 = vld [vmem:[#allocation5] sm:$0xf]  ;;  %v381_v3 = vor.u32 %v512_v1, %v380_v0  ;;  %v511_v4 = vld [vmem:[#allocation5 + $0x4] sm:$0xf0]  ;;  %v43_v5 = vld [vmem:[#allocation2] sm:$0xff]  ;;  %vm70_vm0 = vcmask 261120  }
   0xd   :  { %v441_v6 = vld [vmem:[#allocation5 + $0x90] sm:$0xf]  ;;  %v528_v7 = vld [vmem:[#allocation5 + $0x94] sm:$0xf0]  ;;  %v527_v8 = vld [vmem:[#allocation5 + $0x94] sm:$0xf]  ;;  %v377_v10 = vor.u32 %v511_v4, %v376_v2  ;;  %v44_v20 = vpack.c.bf16 %v43_v5, %v43_v5 }
   0xe   :  { %v443_v9 = vld [vmem:[#allocation5 + $0x98] sm:$0xf0]  ;;  %80 = vmatpush.bf16.msra.mxu0 %v381_v3  ;;  %v442_v11 = vor.u32 %v528_v7, %v441_v6  ;;  %v433_v13 = vld [vmem:[#allocation5 + $0x80] sm:$0xf]  ;;  %v526_v14 = vld [vmem:[#allocation5 + $0x84] sm:$0xf0] }
   0xf   :  { %v446_v12 = vor.u32 %v527_v8, %v443_v9  ;;  %v525_v15 = vld [vmem:[#allocation5 + $0x84] sm:$0xf]  ;;  %v435_v16 = vld [vmem:[#allocation5 + $0x88] sm:$0xf0]  ;;  %v434_v17 = vor.u32 %v526_v14, %v433_v13  ;;  %v425_v19 = vld [vmem:[#allocation5 + $0x70] sm:$0xf] }
  0x10   :  { %187 = vmatpush.bf16.msra.mxu1 %v442_v11  ;;  %v438_v18 = vor.u32 %v525_v15, %v435_v16  ;;  %v524_v21 = vld [vmem:[#allocation5 + $0x74] sm:$0xf0]  ;;  %v523_v22 = vld [vmem:[#allocation5 + $0x74] sm:$0xf]  ;;  %v427_v23 = vld [vmem:[#allocation5 + $0x78] sm:$0xf0] }
  0x11   :  { %200 = vmatpush.bf16.msra.mxu2 %v446_v12  ;;  %v426_v24 = vor.u32 %v524_v21, %v425_v19  ;;  %v430_v25 = vor.u32 %v523_v22, %v427_v23  ;;  %v417_v26 = vld [vmem:[#allocation5 + $0x60] sm:$0xf]  ;;  %v522_v27 = vld [vmem:[#allocation5 + $0x64] sm:$0xf0]  ;;  %v521_v28 = vld [vmem:[#allocation5 + $0x64] sm:$0xf] }
  0x12   :  { %81 = vmatpush.bf16.msra.mxu0 %v377_v10  ;;  %v419_v29 = vld [vmem:[#allocation5 + $0x68] sm:$0xf0]  ;;  %v418_v30 = vor.u32 %v522_v27, %v417_v26  ;;  %v409_v32 = vld [vmem:[#allocation5 + $0x50] sm:$0xf]  ;;  %v520_v33 = vld [vmem:[#allocation5 + $0x54] sm:$0xf0] }
  0x13   :  { %v422_v31 = vor.u32 %v521_v28, %v419_v29  ;;  %v519_v34 = vld [vmem:[#allocation5 + $0x54] sm:$0xf]  ;;  %v411_v35 = vld [vmem:[#allocation5 + $0x58] sm:$0xf0]  ;;  %v410_v36 = vor.u32 %v520_v33, %v409_v32  ;;  %v401_v38 = vld [vmem:[#allocation5 + $0x40] sm:$0xf] }
  0x14   :  { %188 = vmatpush.bf16.msra.mxu1 %v434_v17  ;;  %v414_v37 = vor.u32 %v519_v34, %v411_v35  ;;  %v518_v39 = vld [vmem:[#allocation5 + $0x44] sm:$0xf0]  ;;  %v517_v40 = vld [vmem:[#allocation5 + $0x44] sm:$0xf]  ;;  %v403_v41 = vld [vmem:[#allocation5 + $0x48] sm:$0xf0] }
  0x15   :  { %201 = vmatpush.bf16.msra.mxu2 %v438_v18  ;;  %382 = vmatmul.msk.bf16.vlgmr.msra.gmra.mxu0 %vm70_vm0, %v44_v20  ;;  %v402_v42 = vor.u32 %v518_v39, %v401_v38  ;;  %v406_v43 = vor.u32 %v517_v40, %v403_v41  ;;  %v393_v44 = vld [vmem:[#allocation5 + $0x30] sm:$0xf]  ;;  %v516_v45 = vld [vmem:[#allocation5 + $0x34] sm:$0xf0]  ;;  %v515_v46 = vld [vmem:[#allocation5 + $0x34] sm:$0xf] }
  0x16   :  { %v394_v47 = vor.u32 %v516_v45, %v393_v44  ;;  %v395_v48 = vld [vmem:[#allocation5 + $0x38] sm:$0xf0]  ;;  %v385_v50 = vld [vmem:[#allocation5 + $0x20] sm:$0xf]  ;;  %v514_v51 = vld [vmem:[#allocation5 + $0x24] sm:$0xf0] }
  0x17   :  { %v398_v49 = vor.u32 %v515_v46, %v395_v48  ;;  %v513_v52 = vld [vmem:[#allocation5 + $0x24] sm:$0xf]  ;;  %v386_v53 = vor.u32 %v514_v51, %v385_v50  ;;  %v387_v54 = vld [vmem:[#allocation5 + $0x28] sm:$0xf0]  ;;  %v505_v56 = vld [vmem:[#allocation5 + $0x110] sm:$0xf] }
  0x18   :  { %189 = vmatpush.bf16.msra.mxu1 %v426_v24  ;;  %v390_v55 = vor.u32 %v513_v52, %v387_v54  ;;  %v544_v57 = vld [vmem:[#allocation5 + $0x114] sm:$0xf0]  ;;  %v543_v58 = vld [vmem:[#allocation5 + $0x114] sm:$0xf]  ;;  %v507_v60 = vld [vmem:[#allocation5 + $0x118] sm:$0xf0] }
  0x19   :  { %202 = vmatpush.bf16.msra.mxu2 %v430_v25  ;;  %v506_v59 = vor.u32 %v544_v57, %v505_v56  ;;  %v497_v61 = vld [vmem:[#allocation5 + $0x100] sm:$0xf]  ;;  %v542_v62 = vld [vmem:[#allocation5 + $0x104] sm:$0xf0]  ;;  %v510_v63 = vor.u32 %v543_v58, %v507_v60  ;;  %v541_v0 = vld [vmem:[#allocation5 + $0x104] sm:$0xf] }
  0x1a   :  { %v499_v1 = vld [vmem:[#allocation5 + $0x108] sm:$0xf0]  ;;  %v498_v2 = vor.u32 %v542_v62, %v497_v61  ;;  %v489_v4 = vld [vmem:[#allocation5 + $0xf0] sm:$0xf]  ;;  %v540_v5 = vld [vmem:[#allocation5 + $0xf4] sm:$0xf0] }
  0x1b   :  { %313 = vmatpush.bf16.msra.mxu3 %v506_v59  ;;  %326 = vmatpush.bf16.msrb.mxu0 %v510_v63  ;;  %v502_v3 = vor.u32 %v541_v0, %v499_v1  ;;  %v539_v6 = vld [vmem:[#allocation5 + $0xf4] sm:$0xf]  ;;  %v491_v7 = vld [vmem:[#allocation5 + $0xf8] sm:$0xf0]  ;;  %v490_v8 = vor.u32 %v540_v5, %v489_v4  ;;  %v481_v10 = vld [vmem:[#allocation5 + $0xe0] sm:$0xf] }
  0x1c   :  { %190 = vmatpush.bf16.msra.mxu1 %v418_v30  ;;  %v494_v9 = vor.u32 %v539_v6, %v491_v7  ;;  %v538_v11 = vld [vmem:[#allocation5 + $0xe4] sm:$0xf0]  ;;  %v537_v12 = vld [vmem:[#allocation5 + $0xe4] sm:$0xf]  ;;  %v483_v13 = vld [vmem:[#allocation5 + $0xe8] sm:$0xf0] }
  0x1d   :  { %203 = vmatpush.bf16.msra.mxu2 %v422_v31  ;;  %v482_v14 = vor.u32 %v538_v11, %v481_v10  ;;  %v486_v15 = vor.u32 %v537_v12, %v483_v13  ;;  %v473_v16 = vld [vmem:[#allocation5 + $0xd0] sm:$0xf]  ;;  %v536_v17 = vld [vmem:[#allocation5 + $0xd4] sm:$0xf0]  ;;  %v535_v18 = vld [vmem:[#allocation5 + $0xd4] sm:$0xf] }
  0x1e   :  { %v475_v19 = vld [vmem:[#allocation5 + $0xd8] sm:$0xf0]  ;;  %v45_v20 = vld [vmem:[#allocation5 + $0x120] sm:$0x1]  ;;  %v474_v21 = vor.u32 %v536_v17, %v473_v16  ;;  %v534_v24 = vld [vmem:[#allocation5 + $0xc4] sm:$0xf0] }
  0x1f   :  { %314 = vmatpush.bf16.msra.mxu3 %v498_v2  ;;  %327 = vmatpush.bf16.msrb.mxu0 %v502_v3  ;;  %v478_v22 = vor.u32 %v535_v18, %v475_v19  ;;  %v465_v23 = vld [vmem:[#allocation5 + $0xc0] sm:$0xf]  ;;  %v46_v25 = vunpack.c.l.bf16 %v45_v20  ;;  %v533_v26 = vld [vmem:[#allocation5 + $0xc4] sm:$0xf]  ;;  %v467_v27 = vld [vmem:[#allocation5 + $0xc8] sm:$0xf0] }
  0x20   :  { %191 = vmatpush.bf16.msra.mxu1 %v410_v36  ;;  %v466_v28 = vor.u32 %v534_v24, %v465_v23  ;;  %v470_v29 = vor.u32 %v533_v26, %v467_v27  ;;  %v457_v36 = vld [vmem:[#allocation5 + $0xb0] sm:$0xf]  ;;  %v531_v38 = vld [vmem:[#allocation5 + $0xb4] sm:$0xf]  ;;  %v459_v40 = vld [vmem:[#allocation5 + $0xb8] sm:$0xf0] }
  0x21   :  { %204 = vmatpush.bf16.msra.mxu2 %v414_v37  ;;  %v57_v30 = vperm.slane %v46_v25, 0  ;;  %v532_v37 = vld [vmem:[#allocation5 + $0xb4] sm:$0xf0]  ;;  %v462_v41 = vor.u32 %v531_v38, %v459_v40  ;;  %v529_v44 = vld [vmem:[#allocation5 + $0xa4] sm:$0xf]  ;;  %v636_v48 = vmov 0.0  }
  0x22   :  { %v458_v39 = vor.u32 %v532_v37, %v457_v36  ;;  %v451_v46 = vld [vmem:[#allocation5 + $0xa8] sm:$0xf0]  ;;  %341 = vst [vmem:[#allocation7] sm:$0xff] %v636_v48  ;;  %vm342_vm1 = vcmask 64512   ;;  %v50_v62 = vld [vmem:[#allocation5 + $0x120] sm:$0x22] }
  0x23   :  { %315 = vmatpush.bf16.msra.mxu3 %v490_v8  ;;  %328 = vmatpush.bf16.msrb.mxu0 %v494_v9  ;;  %v52_v63 = vunpack.c.h.bf16 %v50_v62  ;;  %v51_v1 = vunpack.c.l.bf16 %v50_v62  ;;  %s637_s0 = smov 12   ;;  %vm348_vm2 = vcmask 97344   ;;  %s638_s1 = smov [#allocation7]   ;;  %vm354_vm3 = vcmask 130144  }
  0x24   :  { %192 = vmatpush.bf16.msra.mxu1 %v402_v42  ;;  %v449_v42 = vld [vmem:[#allocation5 + $0xa0] sm:$0xf]  ;;  %s361_s21 = sshll.u32 %s638_s1, 4  ;;  %s363_s24 = sshll.u32 %s667_s2, 4  ;;  %s362_s21 = int_to_ptr.vmem [resolvable:$true] %s361_s21  ;;  %s364_s24 = int_to_ptr.hbm [resolvable:$true] %s363_s24 }
  0x25   :  { %205 = vmatpush.bf16.msra.mxu2 %v406_v43  ;;  %v530_v43 = vld [vmem:[#allocation5 + $0xa4] sm:$0xf0]  ;;  %v232_v0 = vperm.slane %v52_v63, 2  ;;  %v231_v4 = vperm.slane %v51_v1, 2 }
  0x26   :  { %v450_v45 = vor.u32 %v530_v43, %v449_v42 }
  0x27   :  { %316 = vmatpush.bf16.msra.mxu3 %v482_v14  ;;  %329 = vmatpush.bf16.msrb.mxu0 %v486_v15 }
  0x28   :  { %193 = vmatpush.bf16.msra.mxu1 %v394_v47  ;;  %v454_v47 = vor.u32 %v529_v44, %v451_v46 }
  0x29   :  { %206 = vmatpush.bf16.msra.mxu2 %v398_v49  ;;  %v47_v49 = vld [vmem:[#allocation5 + $0x120] sm:$0x11] }
  0x2a   :  { %v48_v50 = vunpack.c.l.bf16 %v47_v49  ;;  %v49_v52 = vunpack.c.h.bf16 %v47_v49 }
  0x2b   :  { %317 = vmatpush.bf16.msra.mxu3 %v474_v21  ;;  %330 = vmatpush.bf16.msrb.mxu0 %v478_v22 }
  0x2c   :  { %194 = vmatpush.bf16.msra.mxu1 %v386_v53  ;;  %v105_v51 = vperm.slane %v48_v50, 1  ;;  %v106_v56 = vperm.slane %v49_v52, 1 }
  0x2d   :  { %207 = vmatpush.bf16.msra.mxu2 %v390_v55 }
  0x2f   :  { %318 = vmatpush.bf16.msra.mxu3 %v466_v28  ;;  %331 = vmatpush.bf16.msrb.mxu0 %v470_v29 }
  0x33   :  { %319 = vmatpush.bf16.msra.mxu3 %v458_v39  ;;  %332 = vmatpush.bf16.msrb.mxu0 %v462_v41 }
  0x37   :  { %320 = vmatpush.bf16.msra.mxu3 %v450_v45  ;;  %333 = vmatpush.bf16.msrb.mxu0 %v454_v47 }
  0x92   :  { %v83_v31 = vpop.f32.mrf.mxu0 }
  0x93   :  { %v84_v32 = vadd.f32 %v83_v31, %v57_v30 }
  0x95   :  { %v87_v33 = vmax.f32 %v84_v32, 0.0 }
  0x97   :  { %v88_v34 = vpack.c.bf16 %v87_v33, %v87_v33 }
  0x99   :  { %195 = vmatmul.bf16.vlgmr.msra.gmra.mxu1 %v88_v34  ;;  %208 = vmatmul.bf16.vlgmr.msra.gmra.mxu2 %v88_v34 }
  0x9a   :  { %v85_v35 = vpop.f32.mrf.mxu0 }
 0x116   :  { %v196_v53 = vpop.f32.mrf.mxu1 }
 0x117   :  { %v197_v54 = vadd.f32 %v196_v53, %v105_v51 }
 0x119   :  { %v213_v55 = vmax.f32 %v197_v54, 0.0 }
 0x11b   :  { %v214_v57 = vpack.c.bf16 %v213_v55, %v213_v55 }
 0x11c   :  { %v209_v58 = vpop.f32.mrf.mxu2 }
 0x11d   :  { %v210_v59 = vadd.f32 %v209_v58, %v106_v56  ;;  %321 = vmatmul.bf16.vlgmr.msra.gmra.mxu3 %v214_v57  ;;  %334 = vmatmul.bf16.vlgmr.msrb.gmra.mxu0 %v214_v57 }
 0x11e   :  { %v198_v60 = vpop.f32.mrf.mxu1 }
 0x11f   :  { %343 = vst.msk [vmem:[#allocation7] sm:$0xff] %vm342_vm1, %v210_v59 }
 0x124   :  { %v211_v61 = vpop.f32.mrf.mxu2 }
 0x19a   :  { %v335_v2 = vpop.f32.mrf.mxu0 }
 0x19b   :  { %v336_v3 = vadd.f32 %v335_v2, %v232_v0 }
 0x19d   :  { %v339_v5 = vmul.f32 1.442695, %v336_v3 }
 0x19f   :  { %552 = vpow2.f32 %v339_v5 }
 0x1a0   :  { %v322_v6 = vpop.f32.mrf.mxu3 }
 0x1a1   :  { %v323_v7 = vadd.f32 %v322_v6, %v231_v4 }
 0x1a2   :  { %v337_v8 = vpop.f32.mrf.mxu0 }
 0x1a3   :  { %345 = vrot.lane.b32.xlu0 %v323_v7, %s635_s20 }
 0x1a5   :  { %v553_v10 = vpop.eup %552 }
 0x1a8   :  { %v324_v9 = vpop.f32.mrf.mxu3 }
 0x1ab   :  { %351 = vrot.lane.b32.xlu0 %v553_v10, %s637_s0 }
 0x215   :  { %v346_v11 = vpop.permute.xlu0 %345 }
 0x216   :  { %349 = vst.msk [vmem:[#allocation7] sm:$0xff] %vm348_vm2, %v346_v11 }
 0x21d   :  { %v352_v12 = vpop.permute.xlu0 %351 }
 0x21e   :  { %355 = vst.msk [vmem:[#allocation7] sm:$0xff] %vm354_vm3, %v352_v12 }
 0x21f   :  { %366 = dma.vmem_to_hbm [thread:$0]  %s362_s21, 128, %s364_s24, [#allocation4]  }
 0x220   :  { %630 = dma.done.wait [#allocation4], 128  }
 0x221   :  { %631 = vsyncadd [#allocation4], 4294967168 }
 0x222   :  { %371 = vsyncpa [#allocation3], 1 }
 0x223   :  { %372 = vsyncpa [#allocation6], 1 }
 0x224   :  { %373 = vsyncpa [#allocation4], 1 }

</bundles_post_ra>
